<compile_context>
chip_gen: v6e
topology: v6e:2x2x1
jax: 0.10.0
libtpu: 0.0.40
codegen_flags: <defaults>
</compile_context>

<pallas_src>
import numpy as np
import jax
import jax.numpy as jnp
from jax import lax
from jax.experimental import pallas as pl
from jax.experimental.pallas import tpu as pltpu

MARGIN = 1.0
NUM_INSTANCES = 2


def wloss_kernel(x_ref, tcol_ref, trow_ref, out_ref):
    x = x_ref[...]                                           # (n, D) f32
    n = x.shape[0]

    # Raw Gram matrix first: the MXU push is not gated on any normalization
    # math.  Contracting dims ((1,),(1,)) == A . A^T via the transposed-RHS
    # weight path (no explicit transpose of x).
    g = lax.dot_general(x, x, (((1,), (1,)), ((), ())),
                        preferred_element_type=jnp.float32)  # (n, n)

    # Index planes (int32 throughout).
    row = lax.broadcasted_iota(jnp.int32, (n, n), 0)
    col = lax.broadcasted_iota(jnp.int32, (n, n), 1)
    eye = row == col

    # Same-label mask and the column index of the NUM_INSTANCES-th match per
    # row (NUM_INSTANCES masked min-extractions over the column iota).  This
    # depends only on targets, so it overlaps the MXU latency/drain.
    mask = tcol_ref[...] == trow_ref[...]                    # (n, n) bool
    SENT = jnp.int32(n + 1)
    cand = jnp.where(mask, col, SENT)
    thresh = jnp.min(cand, axis=1, keepdims=True)            # 1st match column
    for _ in range(NUM_INSTANCES - 1):                       # static unroll
        cand = jnp.where(cand <= thresh, SENT, cand)
        thresh = jnp.min(cand, axis=1, keepdims=True)        # k-th match column
    in_first = mask & (col <= thresh)   # first NUM_INSTANCES matches (col order)
    in_rest = mask & (col > thresh)     # remaining matches

    # diag(G)[i] = ||x_i||^2, pulled out in both orientations with two small
    # XLU reduces (no transpose).  Reference eps is 1/(||x||+1e-10); moving a
    # negligible eps inside the sqrt lets a single EUP rsqrt do the job.
    diag_masked = jnp.where(eye, g, 0.0)
    r_col = lax.rsqrt(jnp.sum(diag_masked, axis=1, keepdims=True) + 1e-20)  # (n, 1)
    r_row = lax.rsqrt(jnp.sum(diag_masked, axis=0, keepdims=True) + 1e-20)  # (1, n)

    # Column-scaled Gram: g_c[i, j] = (x_i . x_j) / ||x_j||.  The remaining
    # per-row factor r_col[i] > 0 doesn't change the row-wise argmin, so it is
    # applied to the (2n, 1) mins afterwards.
    g_c = g * r_row

    # Fuse the two masked row-mins into one (2n, n) reduction, then one relu
    # and one sum.  Rows with an empty mask hit the BIG sentinel and
    # contribute relu(margin - huge) = 0 (balanced-batch assumption).
    BIG = jnp.float32(1e30)
    stacked = jnp.concatenate(
        [jnp.where(in_first, g_c, BIG), jnp.where(in_rest, g_c, BIG)], axis=0)  # (2n, n)
    mins = jnp.min(stacked, axis=1, keepdims=True)           # (2n, 1)
    r2 = jnp.concatenate([r_col, r_col], axis=0)             # (2n, 1)

    # Every row contributes relu(margin - min_first) + relu(margin - min_rest);
    # the i >= n/2 branch in the reference only swaps ap/an labels, which is
    # irrelevant to the sum.
    loss = jnp.sum(jnp.maximum(MARGIN - mins * r2, 0.0))
    out_ref[0, 0] = loss                                     # scalar via SMEM


def wloss(inputs, targets):
    # Glue: torch.squeeze + view(n, -1) (done as a single reshape so a
    # hypothetical n == 1 can't lose the batch dimension).
    n = inputs.shape[0]
    x = inputs.reshape(n, -1).astype(jnp.float32)            # (n, D)

    t = targets.astype(jnp.int32)
    tcol = t.reshape(n, 1)
    trow = t.reshape(1, n)

    out = pl.pallas_call(
        wloss_kernel,
        out_shape=jax.ShapeDtypeStruct((1, 1), jnp.float32),
        in_specs=[
            pl.BlockSpec(memory_space=pltpu.VMEM),   # x       (n, D) f32
            pl.BlockSpec(memory_space=pltpu.VMEM),   # targets (n, 1) i32
            pl.BlockSpec(memory_space=pltpu.VMEM),   # targets (1, n) i32
        ],
        out_specs=pl.BlockSpec(memory_space=pltpu.SMEM),
    )(x, tcol, trow)
    return out[0, 0]


def wloss_ref_numpy(inputs, targets, num_instances, margin):
    """Direct numpy transcription of the PyTorch forward (for validation)."""
    x = np.squeeze(np.asarray(inputs, dtype=np.float64))
    n = x.shape[0]
    x = x.reshape(n, -1)
    x = x / (np.linalg.norm(x, axis=1, keepdims=True) + 1e-10)
    dist = x @ x.T
    t = np.asarray(targets)
    mask = t[:, None] == t[None, :]
    loss = 0.0
    for i in range(n):
        sel = dist[i][mask[i]]
        if i >= n / 2:
            ap = margin - sel[0:num_instances].min()
            an = margin - sel[num_instances:].min()
        else:
            ap = margin - sel[num_instances:].min()
            an = margin - sel[0:num_instances].min()
        loss += max(0.0, ap) + max(0.0, an)
    return loss


if __name__ == "__main__":
    # batchsize = 8, num_instances = 2, feature dim = 32.
    # Typical layout: each half of the batch holds num_instances samples per id.
    n, D = 8, 32
    key = jax.random.PRNGKey(0)
    inputs = jax.random.normal(key, (n, D, 1, 1), dtype=jnp.float32)  # NCHW-like
    targets = jnp.array([0, 0, 1, 1, 0, 0, 1, 1], dtype=jnp.int32)

    loss = wloss(inputs, targets)
    loss = jax.block_until_ready(loss)

    ref = wloss_ref_numpy(np.asarray(inputs), np.asarray(targets),
                          NUM_INSTANCES, MARGIN)
    # Tolerance accommodates f32 accumulation + the eps placement difference
    # (inside vs outside the sqrt) summed over 2n relu terms.
    if abs(float(loss) - float(ref)) > 5e-3 * max(1.0, abs(float(ref))):
        raise AssertionError(f"mismatch: kernel={float(loss)} ref={float(ref)}")

    print("KERNEL_OK")
</pallas_src>

<mosaic_0001>
module attributes {stable_mosaic.version = 11 : i64} {
  func.func @wloss_kernel(%arg0: memref<8x32xf32, #tpu.memory_space<vmem>>, %arg1: memref<8x1xi32, #tpu.memory_space<vmem>>, %arg2: memref<1x8xi32, #tpu.memory_space<vmem>>, %arg3: memref<1x1xf32, #tpu.memory_space<smem>>) attributes {dimension_semantics = [], scalar_prefetch = 0 : i64, scratch_operands = 0 : i64, tpu.core_type = #tpu.core_type<tc>} {
    %c0 = arith.constant 0 : index
    %c0_0 = arith.constant 0 : index
    %0 = vector.load %arg0[%c0, %c0_0] : memref<8x32xf32, #tpu.memory_space<vmem>>, vector<8x32xf32>
    %cst = arith.constant dense<0.000000e+00> : vector<8x8xf32>
    %1 = tpu.matmul %0, %0, %cst {dimension_numbers = #tpu.dot_dimension_numbers<[1], [1], [0], [0], [0, 0, 1, 0], [], []>} : vector<8x32xf32>, vector<8x32xf32>, vector<8x8xf32> -> vector<8x8xf32>
    %2 = tpu.iota {dimensions = array<i32: 0>} : vector<8x8xi32>
    %3 = tpu.iota {dimensions = array<i32: 1>} : vector<8x8xi32>
    %4 = arith.cmpi eq, %2, %3 : vector<8x8xi32>
    %c0_1 = arith.constant 0 : index
    %c0_2 = arith.constant 0 : index
    %5 = vector.load %arg1[%c0_1, %c0_2] : memref<8x1xi32, #tpu.memory_space<vmem>>, vector<8x1xi32>
    %c0_3 = arith.constant 0 : index
    %c0_4 = arith.constant 0 : index
    %6 = vector.load %arg2[%c0_3, %c0_4] : memref<1x8xi32, #tpu.memory_space<vmem>>, vector<1x8xi32>
    %7 = vector.broadcast %5 : vector<8x1xi32> to vector<8x8xi32>
    %8 = vector.broadcast %6 : vector<1x8xi32> to vector<8x8xi32>
    %9 = arith.cmpi eq, %7, %8 : vector<8x8xi32>
    %c9_i32 = arith.constant 9 : i32
    %10 = vector.broadcast %c9_i32 : i32 to vector<8x8xi32>
    %11 = arith.select %9, %3, %10 : vector<8x8xi1>, vector<8x8xi32>
    %cst_5 = arith.constant dense<2147483647> : vector<8xi32>
    %12 = vector.multi_reduction <minsi>, %11, %cst_5 [1] : vector<8x8xi32> to vector<8xi32>
    %13 = vector.shape_cast %12 : vector<8xi32> to vector<8x1xi32>
    %14 = vector.broadcast %13 : vector<8x1xi32> to vector<8x8xi32>
    %15 = arith.cmpi sle, %11, %14 : vector<8x8xi32>
    %c9_i32_6 = arith.constant 9 : i32
    %16 = vector.broadcast %c9_i32_6 : i32 to vector<8x8xi32>
    %17 = arith.select %15, %16, %11 : vector<8x8xi1>, vector<8x8xi32>
    %cst_7 = arith.constant dense<2147483647> : vector<8xi32>
    %18 = vector.multi_reduction <minsi>, %17, %cst_7 [1] : vector<8x8xi32> to vector<8xi32>
    %19 = vector.shape_cast %18 : vector<8xi32> to vector<8x1xi32>
    %20 = vector.broadcast %19 : vector<8x1xi32> to vector<8x8xi32>
    %21 = arith.cmpi sle, %3, %20 : vector<8x8xi32>
    %22 = arith.andi %9, %21 : vector<8x8xi1>
    %23 = vector.broadcast %19 : vector<8x1xi32> to vector<8x8xi32>
    %24 = arith.cmpi sgt, %3, %23 : vector<8x8xi32>
    %25 = arith.andi %9, %24 : vector<8x8xi1>
    %cst_8 = arith.constant 0.000000e+00 : f32
    %26 = vector.broadcast %cst_8 : f32 to vector<8x8xf32>
    %27 = arith.select %4, %1, %26 : vector<8x8xi1>, vector<8x8xf32>
    %cst_9 = arith.constant dense<0.000000e+00> : vector<8xf32>
    %28 = vector.multi_reduction <add>, %27, %cst_9 [1] : vector<8x8xf32> to vector<8xf32>
    %29 = vector.shape_cast %28 : vector<8xf32> to vector<8x1xf32>
    %cst_10 = arith.constant 9.99999968E-21 : f32
    %30 = vector.broadcast %cst_10 : f32 to vector<8x1xf32>
    %31 = arith.addf %29, %30 : vector<8x1xf32>
    %32 = math.rsqrt %31 : vector<8x1xf32>
    %cst_11 = arith.constant dense<0.000000e+00> : vector<8xf32>
    %33 = vector.multi_reduction <add>, %27, %cst_11 [0] : vector<8x8xf32> to vector<8xf32>
    %34 = vector.shape_cast %33 : vector<8xf32> to vector<1x8xf32>
    %cst_12 = arith.constant 9.99999968E-21 : f32
    %35 = vector.broadcast %cst_12 : f32 to vector<1x8xf32>
    %36 = arith.addf %34, %35 : vector<1x8xf32>
    %37 = math.rsqrt %36 : vector<1x8xf32>
    %38 = vector.broadcast %37 : vector<1x8xf32> to vector<8x8xf32>
    %39 = arith.mulf %1, %38 : vector<8x8xf32>
    %cst_13 = arith.constant 1.000000e+30 : f32
    %40 = vector.broadcast %cst_13 : f32 to vector<8x8xf32>
    %41 = arith.select %22, %39, %40 : vector<8x8xi1>, vector<8x8xf32>
    %cst_14 = arith.constant 1.000000e+30 : f32
    %42 = vector.broadcast %cst_14 : f32 to vector<8x8xf32>
    %43 = arith.select %25, %39, %42 : vector<8x8xi1>, vector<8x8xf32>
    %44 = tpu.concatenate %41, %43 in 0 : vector<8x8xf32>, vector<8x8xf32> -> vector<16x8xf32>
    %cst_15 = arith.constant dense<0x7F800000> : vector<16xf32>
    %45 = vector.multi_reduction <minimumf>, %44, %cst_15 [1] : vector<16x8xf32> to vector<16xf32>
    %46 = vector.shape_cast %45 : vector<16xf32> to vector<16x1xf32>
    %47 = tpu.concatenate %32, %32 in 0 : vector<8x1xf32>, vector<8x1xf32> -> vector<16x1xf32>
    %48 = arith.mulf %46, %47 : vector<16x1xf32>
    %cst_16 = arith.constant 1.000000e+00 : f32
    %49 = vector.broadcast %cst_16 : f32 to vector<16x1xf32>
    %50 = arith.subf %49, %48 : vector<16x1xf32>
    %cst_17 = arith.constant 0.000000e+00 : f32
    %51 = vector.broadcast %cst_17 : f32 to vector<16x1xf32>
    %52 = arith.maximumf %50, %51 : vector<16x1xf32>
    %53 = vector.shape_cast %52 : vector<16x1xf32> to vector<1x16x1xf32>
    %cst_18 = arith.constant dense<0.000000e+00> : vector<1xf32>
    %54 = vector.multi_reduction <add>, %53, %cst_18 [1, 2] : vector<1x16x1xf32> to vector<1xf32>
    %55 = vector.shape_cast %54 : vector<1xf32> to vector<1x1x1xf32>
    %56 = vector.extract %55[0, 0, 0] : f32 from vector<1x1x1xf32>
    %c0_19 = arith.constant 0 : index
    %c0_20 = arith.constant 0 : index
    %57 = memref.load %arg3[%c0_19, %c0_20] : memref<1x1xf32, #tpu.memory_space<smem>>
    memref.store %56, %arg3[%c0_19, %c0_20] : memref<1x1xf32, #tpu.memory_space<smem>>
    return
  }
}

</mosaic_0001>

<bundles_post_ra>
// kernel: tpu_custom_call.1
= control target key start
LH: loop header
LB: loop body
LE: loop exit
PB: predicated region body
PF: predicated region fallthrough
CT: control target
= control target key end

     0   :  { %v231_v1 = vmov 0   ;;  %s293_s0 = inlined_call_operand.vmem [shape: f32[8,32], index: 0, kind: input, shape index: {}]   ;;  %s294_s1 = inlined_call_operand.vmem [shape: s32[8,1], index: 1, kind: input, shape index: {}]   ;;  %s295_s2 = inlined_call_operand.vmem [shape: s32[1,8], index: 2, kind: input, shape index: {}]   ;;  %s296_s3 = inlined_call_operand.hbm [shape: f32[1,1], index: 3, kind: output, shape index: {}]  }
   0x1   :  { %v95_v0 = vld [vmem:[%s294_s1] sm:$0xff]  ;;  %216 = vset.pattern.permute.xlu0 %v231_v1 }
   0x2   :  { %8 = vsyncpa [#allocation3], 0  ;;  %98 = vperm.xlu0 %216, %v95_v0   ;;  %v90_v2 = vlaneseq  ;;  %v261_v3 = vld [vmem:[%s295_s2] ss:$0 sm:$0xff]  ;;  %vm106_vm0 = vcmask 64512   ;;  %vm16_vm3 = vcmask 261120  }
   0x3   :  { %v15_v14 = vld [vmem:[%s293_s0] sm:$0xff]  ;;  %v232_v15 = vmov 0.0   ;;  %vm233_vm4 = vmmov 0   ;;  %vm172_vm12 = vcmask 7168   ;;  %s234_s16 = smov [#allocation2]  }
   0x4   :  { %v263_v4 = vand.u32 127, %v90_v2  ;;  %205 = vmatprep.subr.mxu0 %v232_v15  ;;  %207 = vmatprep.mubr.msk.f32.mxu0 %vm233_vm4, %v232_v15  ;;  %v91_v28 = vshrl.u32 %v90_v2, 7 }
   0x5   :  { %206 = vmatpush3.xpose.msk.msra.mxu0 %vm16_vm3, %v15_v14 }
   0x6   :  { %vm94_vm6 = vcmp.eq.s32.totalorder %v91_v28, %v263_v4 }
   0x8   :  { %208 = vmatmul.mubr.msk.f32.vlgmr.msra.gmra.mxu0 %vm16_vm3, %v15_v14 }
  0x7d   :  { %v265_v5 = vpop.permute.xlu0 %98 }
  0x7e   :  { %vm104_vm1 = vcmp.eq.s32.totalorder %v265_v5, %v261_v3 }
  0x7f   :  { %v105_v6 = vsel %vm104_vm1, %v263_v4, 9 }
  0x80   :  { %v107_v7 = vsel %vm106_vm0, %v105_v6, 2147483647 }
  0x81   :  { %v109_v8 = vshra.s32 %v107_v7, 16  ;;  %v108_v10 = vand.u32 65535, %v107_v7 }
  0x83   :  { %v111_v9 = vcvt.s32.f32 %v109_v8  ;;  %v110_v12 = vcvt.s32.f32 %v108_v10 }
  0x85   :  { %112 = vmin.xlane.f32.xlu0 %v111_v9 }
  0xc8   :  { %v86_v25 = vpop.f32.mrf.mxu0 }
  0xc9   :  { %v143_v32 = vsel %vm94_vm6, %v86_v25, 0.0 }
  0xca   :  { %v209_v26 = vpop.f32.mrf.mxu0  ;;  %v144_v33 = vsel %vm106_vm0, %v143_v32, 0.0 }
  0xcb   :  { %v149_v34 = vrot.slane %v144_v33, 4 }
  0xcd   :  { %v150_v35 = vadd.f32 %v149_v34, %v144_v33 }
  0xcf   :  { %v151_v36 = vrot.slane %v150_v35, 2 }
  0xd1   :  { %v152_v37 = vadd.f32 %v151_v36, %v150_v35 }
  0xd3   :  { %v153_v38 = vrot.slane %v152_v37, 1 }
  0xd5   :  { %v154_v39 = vadd.f32 %v153_v38, %v152_v37 }
  0xd7   :  { %v155_v40 = vadd.f32 1e-20, %v154_v39 }
  0xd9   :  { %217 = vrsqrt.f32 %v155_v40 }
  0xe6   :  { %v218_v45 = vpop.eup %217 }
  0xe7   :  { %v157_v47 = vmul.f32 %v218_v45, %v86_v25 }
 0x10e   :  { %v113_v11 = vpop.xlane.xlu0 %112 }
 0x10f   :  { %vm114_vm2 = vcmp.eq.f32.partialorder %v111_v9, %v113_v11  ;;  %v119_v16 = vcvt.f32.s32 %v113_v11 }
 0x110   :  { %v115_v13 = vsel %vm114_vm2, %v110_v12, inf }
 0x111   :  { %116 = vmin.xlane.f32.xlu1 %v115_v13  ;;  %v120_v18 = vshll.u32 %v119_v16, 16 }
 0x19a   :  { %v117_v17 = vpop.xlane.xlu1 %116 }
 0x19b   :  { %v118_v19 = vcvt.f32.s32 %v117_v17 }
 0x19d   :  { %v121_v20 = vadd.s32 %v120_v18, %v118_v19 }
 0x19f   :  { %vm122_vm5 = vcmp.le.s32.totalorder %v105_v6, %v121_v20 }
 0x1a0   :  { %v123_v21 = vsel %vm122_vm5, 9, %v105_v6 }
 0x1a1   :  { %v124_v22 = vsel %vm106_vm0, %v123_v21, 2147483647 }
 0x1a2   :  { %v126_v23 = vshra.s32 %v124_v22, 16  ;;  %v125_v27 = vand.u32 65535, %v124_v22 }
 0x1a4   :  { %v128_v24 = vcvt.s32.f32 %v126_v23  ;;  %v127_v30 = vcvt.s32.f32 %v125_v27 }
 0x1a6   :  { %129 = vmin.xlane.f32.xlu1 %v128_v24 }
 0x22f   :  { %v130_v29 = vpop.xlane.xlu1 %129 }
 0x230   :  { %vm131_vm7 = vcmp.eq.f32.partialorder %v128_v24, %v130_v29  ;;  %v136_v41 = vcvt.f32.s32 %v130_v29 }
 0x231   :  { %v132_v31 = vsel %vm131_vm7, %v127_v30, inf }
 0x232   :  { %133 = vmin.xlane.f32.xlu1 %v132_v31  ;;  %v137_v43 = vshll.u32 %v136_v41, 16 }
 0x236   :  { %145 = vadd.xlane.f32.xlu1 %v144_v33 }
 0x2bb   :  { %v134_v42 = vpop.xlane.xlu1 %133 }
 0x2bc   :  { %v135_v44 = vcvt.f32.s32 %v134_v42 }
 0x2be   :  { %v138_v46 = vadd.s32 %v137_v43, %v135_v44 }
 0x2bf   :  { %v146_v52 = vpop.xlane.xlu1 %145 }
 0x2c0   :  { %vm139_vm8 = vcmp.le.s32.totalorder %v263_v4, %v138_v46  ;;  %vm141_vm9 = vcmp.gt.s32.totalorder %v263_v4, %v138_v46  ;;  %v147_v53 = vadd.f32 1e-20, %v146_v52 }
 0x2c1   :  { %vm140_vm10 = vmand %vm104_vm1, %vm139_vm8 }
 0x2c2   :  { %v158_v48 = vsel %vm140_vm10, %v157_v47, 1e+30  ;;  %vm142_vm11 = vmand %vm104_vm1, %vm141_vm9  ;;  %219 = vrsqrt.f32 %v147_v53 }
 0x2c3   :  { %v160_v49 = vsel %vm106_vm0, %v158_v48, inf  ;;  %v159_v50 = vsel %vm142_vm11, %v157_v47, 1e+30 }
 0x2c4   :  { %161 = vmin.xlane.f32.xlu1 %v160_v49  ;;  %v163_v51 = vsel %vm106_vm0, %v159_v50, inf }
 0x2c8   :  { %164 = vmin.xlane.f32.xlu1 %v163_v51 }
 0x2cf   :  { %v220_v54 = vpop.eup %219 }
 0x34d   :  { %v162_v55 = vpop.xlane.xlu1 %161 }
 0x34e   :  { %v166_v56 = vmul.f32 %v220_v54, %v162_v55 }
 0x350   :  { %v168_v57 = vsub.f32 1.0, %v166_v56 }
 0x351   :  { %v165_v58 = vpop.xlane.xlu1 %164 }
 0x352   :  { %v167_v59 = vmul.f32 %v220_v54, %v165_v58  ;;  %v170_v60 = vmax.f32 %v168_v57, 0.0 }
 0x354   :  { %v169_v61 = vsub.f32 1.0, %v167_v59  ;;  %v173_v63 = vsel %vm172_vm12, %v170_v60, 0.0 }
 0x356   :  { %v171_v62 = vmax.f32 %v169_v61, 0.0 }
 0x358   :  { %v174_v0 = vsel %vm172_vm12, %v171_v62, 0.0 }
 0x359   :  { %v175_v1 = vadd.f32 %v174_v0, %v173_v63 }
 0x35b   :  { %176 = vadd.xlane.f32.xlu1 %v175_v1 }
 0x3e4   :  { %v177_v2 = vpop.xlane.xlu1 %176 }
 0x3e5   :  { %v178_v3 = vrot.slane %v177_v2, 4 }
 0x3e7   :  { %v179_v4 = vadd.f32 %v178_v3, %v177_v2 }
 0x3e9   :  { %v180_v5 = vrot.slane %v179_v4, 2 }
 0x3eb   :  { %v181_v6 = vadd.f32 %v180_v5, %v179_v4 }
 0x3ed   :  { %v182_v7 = vrot.slane %v181_v6, 1 }
 0x3ef   :  { %v183_v8 = vadd.f32 %v182_v7, %v181_v6 }
 0x3f1   :  { %210 = vpush %v183_v8 }
 0x422   :  { %s211_s0 = spop %210 }
 0x423   :  { %186 = sst [smem:[#allocation2]] %s211_s0 }
 0x424   :  { %194 = dma.smem_to_hbm %s234_s16, 16, %s296_s3, [#allocation3]  }
 0x425   :  { %229 = dma.done.wait [#allocation3], 16  }
 0x426   :  { %230 = vsyncadd [#allocation3], 4294967280 }
 0x427   :  { %198 = sfence }
 0x428   :  { %199 = vsyncpa [#allocation3], 1 }

</bundles_post_ra>
